<compile_context>
chip_gen: v7x
topology: tpu7x:2x2x1
jax: 0.10.0
libtpu: 0.0.40
codegen_flags: <defaults>
</compile_context>

<pallas_src>
import functools
import math

import jax
import jax.numpy as jnp
import numpy as np
from jax.experimental import pallas as pl
from jax.experimental.pallas import tpu as pltpu

_LANES = 128


def _freq_kernel(x_ref, o_ref, *, n_freqs, mask_vals, exact_transcendentals):
    """x_ref: (tm, 128) inputs; o_ref: (2*n_freqs, tm, 128) outputs.

    o_ref[2*i]   = sin(2**i * x) * mask[i]
    o_ref[2*i+1] = cos(2**i * x) * mask[i]
    """
    x = x_ref[...].astype(jnp.float32)
    s = jnp.sin(x)
    c = jnp.cos(x)
    for i in range(n_freqs):
        if i > 0:
            if exact_transcendentals:
                fx = float(2.0 ** i) * x
                s, c = jnp.sin(fx), jnp.cos(fx)
            else:
                # Frequencies are exactly 2**i -> double-angle recurrence keeps
                # every octave past the first on the VPU instead of the single
                # EUP slot.  Error grows ~2**i ulp vs direct evaluation.
                s, c = 2.0 * s * c, c * c - s * s
        m = mask_vals[i]
        so = s if m == 1.0 else s * m
        co = c if m == 1.0 else c * m
        o_ref[2 * i] = so.astype(o_ref.dtype)
        o_ref[2 * i + 1] = co.astype(o_ref.dtype)


def vanilla_frequency(x, n_frequencies, mask=None, *, block_rows=2048,
                      out_dtype=None, exact_transcendentals=False):
    """Pallas implementation of VanillaFrequency.forward.

    x: (..., in_channels) float array.
    returns: (..., in_channels * 2 * n_frequencies), channel order
             [sin(f0*x)*C, cos(f0*x)*C, sin(f1*x)*C, cos(f1*x)*C, ...].
    """
    n_frequencies = int(n_frequencies)
    assert n_frequencies >= 1
    in_channels = x.shape[-1]
    n_out = in_channels * 2 * n_frequencies
    batch_shape = x.shape[:-1]
    n_rows = math.prod(batch_shape) if batch_shape else 1

    out_dtype = x.dtype if out_dtype is None else out_dtype

    # Static mask (result of update_step(None, None) -> all ones).
    if mask is None:
        mask_vals = (1.0,) * n_frequencies
    else:
        mask_vals = tuple(float(m) for m in mask)
        assert len(mask_vals) == n_frequencies
    # TODO(synk): the training-time cosine masking schedule (n_masking_step > 0
    # with a real global_step) is computed host-side in the PyTorch module;
    # pass the resulting mask values here (they are baked at trace time, so a
    # mask change implies a recompile).

    # ---- Lane-dense flattening: view all elements as (R, 128). ----
    total = n_rows * in_channels
    flat = x.reshape(total)
    rows = -(-total // _LANES)
    lane_pad = rows * _LANES - total
    if lane_pad:
        # Only hit when numel(x) is not a multiple of 128 (single small pad).
        flat = jnp.pad(flat, (0, lane_pad))
    x2d = flat.reshape(rows, _LANES)

    # ---- Tile rows: biggest block that keeps double-buffered in+out blocks
    # under ~24 MiB of VMEM (safe on v7x's 64 MiB, plenty on v5e/v6e). ----
    in_itemsize = np.dtype(x.dtype).itemsize
    out_itemsize = np.dtype(out_dtype).itemsize
    vmem_budget = 24 * 1024 * 1024
    per_row_bytes = 2 * _LANES * (in_itemsize + 2 * n_frequencies * out_itemsize)
    tm = min(int(block_rows), max(8, vmem_budget // per_row_bytes))
    tm = (tm // 8) * 8
    if rows <= tm:
        tm = rows                      # single full-extent block (always legal)
    grid_rows = pl.cdiv(rows, tm)      # ragged last block masked by Pallas

    kernel = functools.partial(
        _freq_kernel,
        n_freqs=n_frequencies,
        mask_vals=mask_vals,
        exact_transcendentals=exact_transcendentals,
    )

    n_elems = rows * _LANES
    cost = pl.CostEstimate(
        flops=n_elems * (2 + 5 * max(0, n_frequencies - 1)),
        transcendentals=n_elems * (2 * n_frequencies if exact_transcendentals else 2),
        bytes_accessed=n_elems * in_itemsize
        + n_elems * 2 * n_frequencies * out_itemsize,
    )

    slab = pl.pallas_call(
        kernel,
        out_shape=jax.ShapeDtypeStruct((2 * n_frequencies, rows, _LANES), out_dtype),
        grid_spec=pltpu.PrefetchScalarGridSpec(
            num_scalar_prefetch=0,
            grid=(grid_rows,),
            in_specs=[pl.BlockSpec((tm, _LANES), lambda r: (r, 0))],
            out_specs=pl.BlockSpec((2 * n_frequencies, tm, _LANES),
                                   lambda r: (0, r, 0)),
        ),
        compiler_params=pltpu.CompilerParams(
            dimension_semantics=("parallel",),
            vmem_limit_bytes=48 * 1024 * 1024,
        ),
        cost_estimate=cost,
    )(x2d)

    # ---- Restore the PyTorch channel interleave (layout plumbing only). ----
    out = slab.reshape(2 * n_frequencies, rows * _LANES)[:, :total]
    out = out.reshape(2 * n_frequencies, n_rows, in_channels)
    out = jnp.transpose(out, (1, 0, 2))
    return out.reshape(*batch_shape, n_out)


def vanilla_frequency_ref(x, n_frequencies):
    """Pure-JAX reference mirroring the PyTorch forward (all-ones mask)."""
    freq_bands = 2.0 ** jnp.arange(n_frequencies, dtype=jnp.float32)
    mask = jnp.ones((n_frequencies,), jnp.float32)
    out = []
    for i in range(n_frequencies):
        for fn in (jnp.sin, jnp.cos):
            out.append(fn(freq_bands[i] * x) * mask[i])
    return jnp.concatenate(out, axis=-1)


if __name__ == "__main__":
    key = jax.random.PRNGKey(0)

    # Case 1: total elements a multiple of 128 (clean lane-dense path).
    batch, seq, in_channels = 2, 64, 4
    n_frequencies = 4
    x = jax.random.normal(key, (batch, seq, in_channels), dtype=jnp.float32)

    out = vanilla_frequency(x, n_frequencies)
    out = jax.block_until_ready(out)
    ref = vanilla_frequency_ref(x, n_frequencies)
    assert out.shape == (batch, seq, in_channels * 2 * n_frequencies), out.shape
    # atol=1e-4: the double-angle recurrence differs from direct sin(2**i * x)
    # by a few ulp per octave at the highest frequency.
    assert jnp.allclose(out, ref, atol=1e-4, rtol=1e-5), float(
        jnp.max(jnp.abs(out - ref)))

    # Case 2: ragged element count (exercises the <128-element lane pad path).
    key2 = jax.random.PRNGKey(1)
    x2 = jax.random.normal(key2, (3, 17, 3), dtype=jnp.float32)
    out2 = jax.block_until_ready(vanilla_frequency(x2, 3))
    ref2 = vanilla_frequency_ref(x2, 3)
    assert out2.shape == (3, 17, 3 * 2 * 3), out2.shape
    assert jnp.allclose(out2, ref2, atol=1e-4, rtol=1e-5), float(
        jnp.max(jnp.abs(out2 - ref2)))

    print("KERNEL_OK")
</pallas_src>

<mosaic_0001>
module attributes {stable_mosaic.version = 11 : i64} {
  func.func @_freq_kernel(%arg0: i32, %arg1: memref<4x128xf32, #tpu.memory_space<vmem>>, %arg2: memref<8x4x128xf32, #tpu.memory_space<vmem>>) attributes {dimension_semantics = [#tpu.dimension_semantics<parallel>], iteration_bounds = array<i64: 1>, scalar_prefetch = 0 : i64, scratch_operands = 0 : i64, tpu.core_type = #tpu.core_type<tc>, window_params = [{transform_indices = @transform_0, window_bounds = array<i64: 4, 128>}, {transform_indices = @transform_1, window_bounds = array<i64: 8, 4, 128>}]} {
    %c0 = arith.constant 0 : index
    %c0_0 = arith.constant 0 : index
    %0 = vector.load %arg1[%c0, %c0_0] : memref<4x128xf32, #tpu.memory_space<vmem>>, vector<4x128xf32>
    %1 = math.sin %0 : vector<4x128xf32>
    %2 = math.cos %0 : vector<4x128xf32>
    %c0_1 = arith.constant 0 : index
    %c0_2 = arith.constant 0 : index
    %c0_3 = arith.constant 0 : index
    %3 = vector.load %arg2[%c0_1, %c0_2, %c0_3] : memref<8x4x128xf32, #tpu.memory_space<vmem>>, vector<1x4x128xf32>
    %4 = vector.shape_cast %3 : vector<1x4x128xf32> to vector<4x128xf32>
    %5 = vector.shape_cast %1 : vector<4x128xf32> to vector<1x4x128xf32>
    tpu.vector_store %arg2[%c0_1, %c0_2, %c0_3], %5 {strides = array<i32>} : memref<8x4x128xf32, #tpu.memory_space<vmem>>, vector<1x4x128xf32>,
    %c1 = arith.constant 1 : index
    %c0_4 = arith.constant 0 : index
    %c0_5 = arith.constant 0 : index
    %6 = vector.load %arg2[%c1, %c0_4, %c0_5] : memref<8x4x128xf32, #tpu.memory_space<vmem>>, vector<1x4x128xf32>
    %7 = vector.shape_cast %6 : vector<1x4x128xf32> to vector<4x128xf32>
    %8 = vector.shape_cast %2 : vector<4x128xf32> to vector<1x4x128xf32>
    tpu.vector_store %arg2[%c1, %c0_4, %c0_5], %8 {strides = array<i32>} : memref<8x4x128xf32, #tpu.memory_space<vmem>>, vector<1x4x128xf32>,
    %cst = arith.constant 2.000000e+00 : f32
    %9 = vector.broadcast %cst : f32 to vector<4x128xf32>
    %10 = arith.mulf %9, %1 : vector<4x128xf32>
    %11 = arith.mulf %10, %2 : vector<4x128xf32>
    %12 = arith.mulf %2, %2 : vector<4x128xf32>
    %13 = arith.mulf %1, %1 : vector<4x128xf32>
    %14 = arith.subf %12, %13 : vector<4x128xf32>
    %c2 = arith.constant 2 : index
    %c0_6 = arith.constant 0 : index
    %c0_7 = arith.constant 0 : index
    %15 = vector.load %arg2[%c2, %c0_6, %c0_7] : memref<8x4x128xf32, #tpu.memory_space<vmem>>, vector<1x4x128xf32>
    %16 = vector.shape_cast %15 : vector<1x4x128xf32> to vector<4x128xf32>
    %17 = vector.shape_cast %11 : vector<4x128xf32> to vector<1x4x128xf32>
    tpu.vector_store %arg2[%c2, %c0_6, %c0_7], %17 {strides = array<i32>} : memref<8x4x128xf32, #tpu.memory_space<vmem>>, vector<1x4x128xf32>,
    %c3 = arith.constant 3 : index
    %c0_8 = arith.constant 0 : index
    %c0_9 = arith.constant 0 : index
    %18 = vector.load %arg2[%c3, %c0_8, %c0_9] : memref<8x4x128xf32, #tpu.memory_space<vmem>>, vector<1x4x128xf32>
    %19 = vector.shape_cast %18 : vector<1x4x128xf32> to vector<4x128xf32>
    %20 = vector.shape_cast %14 : vector<4x128xf32> to vector<1x4x128xf32>
    tpu.vector_store %arg2[%c3, %c0_8, %c0_9], %20 {strides = array<i32>} : memref<8x4x128xf32, #tpu.memory_space<vmem>>, vector<1x4x128xf32>,
    %cst_10 = arith.constant 2.000000e+00 : f32
    %21 = vector.broadcast %cst_10 : f32 to vector<4x128xf32>
    %22 = arith.mulf %21, %11 : vector<4x128xf32>
    %23 = arith.mulf %22, %14 : vector<4x128xf32>
    %24 = arith.mulf %14, %14 : vector<4x128xf32>
    %25 = arith.mulf %11, %11 : vector<4x128xf32>
    %26 = arith.subf %24, %25 : vector<4x128xf32>
    %c4 = arith.constant 4 : index
    %c0_11 = arith.constant 0 : index
    %c0_12 = arith.constant 0 : index
    %27 = vector.load %arg2[%c4, %c0_11, %c0_12] : memref<8x4x128xf32, #tpu.memory_space<vmem>>, vector<1x4x128xf32>
    %28 = vector.shape_cast %27 : vector<1x4x128xf32> to vector<4x128xf32>
    %29 = vector.shape_cast %23 : vector<4x128xf32> to vector<1x4x128xf32>
    tpu.vector_store %arg2[%c4, %c0_11, %c0_12], %29 {strides = array<i32>} : memref<8x4x128xf32, #tpu.memory_space<vmem>>, vector<1x4x128xf32>,
    %c5 = arith.constant 5 : index
    %c0_13 = arith.constant 0 : index
    %c0_14 = arith.constant 0 : index
    %30 = vector.load %arg2[%c5, %c0_13, %c0_14] : memref<8x4x128xf32, #tpu.memory_space<vmem>>, vector<1x4x128xf32>
    %31 = vector.shape_cast %30 : vector<1x4x128xf32> to vector<4x128xf32>
    %32 = vector.shape_cast %26 : vector<4x128xf32> to vector<1x4x128xf32>
    tpu.vector_store %arg2[%c5, %c0_13, %c0_14], %32 {strides = array<i32>} : memref<8x4x128xf32, #tpu.memory_space<vmem>>, vector<1x4x128xf32>,
    %cst_15 = arith.constant 2.000000e+00 : f32
    %33 = vector.broadcast %cst_15 : f32 to vector<4x128xf32>
    %34 = arith.mulf %33, %23 : vector<4x128xf32>
    %35 = arith.mulf %34, %26 : vector<4x128xf32>
    %36 = arith.mulf %26, %26 : vector<4x128xf32>
    %37 = arith.mulf %23, %23 : vector<4x128xf32>
    %38 = arith.subf %36, %37 : vector<4x128xf32>
    %c6 = arith.constant 6 : index
    %c0_16 = arith.constant 0 : index
    %c0_17 = arith.constant 0 : index
    %39 = vector.load %arg2[%c6, %c0_16, %c0_17] : memref<8x4x128xf32, #tpu.memory_space<vmem>>, vector<1x4x128xf32>
    %40 = vector.shape_cast %39 : vector<1x4x128xf32> to vector<4x128xf32>
    %41 = vector.shape_cast %35 : vector<4x128xf32> to vector<1x4x128xf32>
    tpu.vector_store %arg2[%c6, %c0_16, %c0_17], %41 {strides = array<i32>} : memref<8x4x128xf32, #tpu.memory_space<vmem>>, vector<1x4x128xf32>,
    %c7 = arith.constant 7 : index
    %c0_18 = arith.constant 0 : index
    %c0_19 = arith.constant 0 : index
    %42 = vector.load %arg2[%c7, %c0_18, %c0_19] : memref<8x4x128xf32, #tpu.memory_space<vmem>>, vector<1x4x128xf32>
    %43 = vector.shape_cast %42 : vector<1x4x128xf32> to vector<4x128xf32>
    %44 = vector.shape_cast %38 : vector<4x128xf32> to vector<1x4x128xf32>
    tpu.vector_store %arg2[%c7, %c0_18, %c0_19], %44 {strides = array<i32>} : memref<8x4x128xf32, #tpu.memory_space<vmem>>, vector<1x4x128xf32>,
    return
  }
  func.func @transform_0(%arg0: i32) -> (i32, i32) {
    %c0_i32 = arith.constant 0 : i32
    %c0_i32_0 = arith.constant 0 : i32
    return %arg0, %c0_i32 : i32, i32
  }
  func.func @transform_1(%arg0: i32) -> (i32, i32, i32) {
    %c0_i32 = arith.constant 0 : i32
    %c0_i32_0 = arith.constant 0 : i32
    %c0_i32_1 = arith.constant 0 : i32
    return %c0_i32, %arg0, %c0_i32_0 : i32, i32, i32
  }
}

</mosaic_0001>

<bundles_post_ra>
// kernel: tpu_custom_call.1
= control target key start
LH: loop header
LB: loop body
LE: loop exit
PB: predicated region body
PF: predicated region fallthrough
CT: control target
= control target key end

     0   :  { %6 = vsyncpa [#allocation3], 0  ;;  %s415_s0 = inlined_call_operand.hbm [shape: f32[4,128], index: 0, kind: input, shape index: {}]   ;;  %s416_s1 = inlined_call_operand.hbm [shape: f32[8,4,128], index: 1, kind: output, shape index: {}]  }
   0x1   :  { %7 = vsyncpa [#allocation4], 0  ;;  %s350_s6 = smov [#allocation2]   ;;  %s302_s10 = scalar_lea.hbm %s415_s0, 64 }
   0x2   :  { %s14_s7 = sshll.u32 %s350_s6, 4  ;;  %p303_p0 = scmp.ne.s32.totalorder %s415_s0, %s302_s10  ;;  %s15_s7 = int_to_ptr.vmem [resolvable:$true] %s14_s7 }
   0x3   :  { %p306_p1 = scmp.lt.u32.totalorder %s302_s10, %s415_s0 }
   0x5   :  { %p308_p2 = pnand %p306_p1, %p303_p0 }
   0x7   :  { %311 = shalt.err (!%p308_p2)
}
   0x8   :  { %s312_s15 = scalar_lea.vmem %s15_s7, 64  ;;  %p317_p4 = scmp.lt.s32.totalorder %s15_s7, %s15_s7 }
   0x9   :  { %p313_p3 = scmp.ne.s32.totalorder %s15_s7, %s312_s15  ;;  %p318_p5 = scmp.lt.s32.totalorder %s312_s15, %s312_s15 }
   0xb   :  { %p319_p6 = por %p318_p5, %p317_p4 }
   0xd   :  { %p320_p7 = pnand %p319_p6, %p313_p3 }
   0xf   :  { %323 = shalt.err (!%p320_p7)
}
  0x10   :  { %17 = dma.hbm_to_vmem [thread:$0]  %s415_s0, 64, %s15_s7, [#allocation3]  }
  0x11   :  { %346 = dma.done.wait [#allocation3], 64  }
  0x12   :  { %347 = vsyncadd [#allocation3], 4294967232  ;;  %v382_v0 = vld [vmem:[#allocation2] sm:$0xf]  ;;  %v351_v12 = vmov 683565275  }
  0x13   :  { %v25_v1 = vand.u32 2139095040, %v382_v0  ;;  %v22_v3 = vand.u32 2147483647, %v382_v0  ;;  %v352_v14 = vmov 2475754826   ;;  %vm24_vm7 = vcmp.lt.s32.totalorder %v382_v0, 0 }
  0x14   :  { %v353_v16 = vmov 2131351028   ;;  %v354_v18 = vmov 2102212464   ;;  %v355_v20 = vmov 920167782   ;;  %vm114_vm15 = vweird.f32 %v382_v0 }
  0x15   :  { %v26_v2 = vshrl.u32 %v25_v1, 23  ;;  %v29_v6 = vand.u32 8388607, %v22_v3  ;;  %v356_v27 = vmov 1326507024   ;;  %s357_s0 = smov [#allocation5]  }
  0x16   :  { %vm23_vm8 = vcmp.le.f32.partialorder %v22_v3, 0.7853982  ;;  %s264_s18 = sshll.u32 %s357_s0, 4  ;;  %s265_s18 = int_to_ptr.vmem [resolvable:$true] %s264_s18 }
  0x17   :  { %v276_v4 = vadd.s32 4294967169, %v26_v2  ;;  %v30_v9 = vor.u32 8388608, %v29_v6  ;;  %s324_s19 = scalar_lea.vmem %s265_s18, 512  ;;  %p329_p9 = scmp.lt.s32.totalorder %s265_s18, %s265_s18 }
  0x18   :  { %p325_p8 = scmp.ne.s32.totalorder %s265_s18, %s324_s19  ;;  %p330_p10 = scmp.lt.s32.totalorder %s324_s19, %s324_s19 }
  0x19   :  { %v32_v5 = vadd.s32 1, %v276_v4  ;;  %v70_v29 = vshll.u32 %v30_v9, 8 }
  0x1a   :  { %p331_p11 = por %p330_p10, %p329_p9 }
  0x1b   :  { %vm33_vm0 = vcmp.gt.s32.totalorder %v32_v5, 0 }
  0x1c   :  { %v34_v7 = vsel %vm33_vm0, %v32_v5, 0  ;;  %p332_p12 = pnand %p331_p11, %p325_p8 }
  0x1d   :  { %v36_v8 = vand.u32 31, %v34_v7  ;;  %v35_v10 = vshrl.u32 %v34_v7, 5 }
  0x1f   :  { %v37_v11 = vsub.s32 32, %v36_v8  ;;  %v39_v13 = vshll.u32 %v351_v12, %v36_v8  ;;  %v42_v15 = vshll.u32 %v352_v14, %v36_v8  ;;  %v45_v17 = vshll.u32 %v353_v16, %v36_v8 }
  0x20   :  { %v48_v19 = vshll.u32 %v354_v18, %v36_v8  ;;  %v51_v21 = vshll.u32 %v355_v20, %v36_v8  ;;  %vm54_vm1 = vcmp.lt.s32.totalorder %v35_v10, 1  ;;  %vm57_vm2 = vcmp.lt.s32.totalorder %v35_v10, 4 }
  0x21   :  { %v38_v22 = vshrl.u32 %v351_v12, %v37_v11  ;;  %v40_v23 = vshrl.u32 %v352_v14, %v37_v11  ;;  %v43_v24 = vshrl.u32 %v353_v16, %v37_v11  ;;  %v46_v25 = vshrl.u32 %v354_v18, %v37_v11 }
  0x22   :  { %v49_v26 = vshrl.u32 %v355_v20, %v37_v11  ;;  %v52_v28 = vshrl.u32 %v356_v27, %v37_v11  ;;  %vm55_vm3 = vcmp.lt.s32.totalorder %v35_v10, 2  ;;  %vm56_vm4 = vcmp.lt.s32.totalorder %v35_v10, 3 }
  0x23   :  { %v41_v30 = vor.u32 %v40_v23, %v39_v13  ;;  %v44_v31 = vor.u32 %v43_v24, %v42_v15  ;;  %v47_v32 = vor.u32 %v46_v25, %v45_v17 }
  0x24   :  { %v50_v33 = vor.u32 %v49_v26, %v48_v19  ;;  %v53_v34 = vor.u32 %v52_v28, %v51_v21 }
  0x25   :  { %v58_v35 = vsel %vm54_vm1, %v38_v22, %v41_v30  ;;  %v59_v36 = vsel %vm57_vm2, %v47_v32, 2102212464  ;;  %v62_v37 = vsel %vm54_vm1, %v41_v30, %v44_v31  ;;  %v66_v38 = vsel %vm54_vm1, %v44_v31, %v47_v32 }
  0x26   :  { %v60_v39 = vsel %vm56_vm4, %v44_v31, %v59_v36  ;;  %v63_v40 = vsel %vm57_vm2, %v50_v33, 920167782  ;;  %v67_v41 = vsel %vm57_vm2, %v53_v34, 1326507024 }
  0x27   :  { %v64_v42 = vsel %vm56_vm4, %v47_v32, %v63_v40  ;;  %v68_v43 = vsel %vm56_vm4, %v50_v33, %v67_v41  ;;  %v61_v44 = vsel %vm55_vm3, %v58_v35, %v60_v39 }
  0x28   :  { %v65_v45 = vsel %vm55_vm3, %v62_v37, %v64_v42  ;;  %v69_v46 = vsel %vm55_vm3, %v66_v38, %v68_v43  ;;  %v77_v51 = vmul.u32 %v70_v29, %v61_v44 }
  0x29   :  { %v388_v47 = vmul.u32.u64.low %v70_v29, %v69_v46  ;;  %v389_v48 = vmul.u32.u64.high %v70_v29, %v69_v46, %v388_v47  ;;  %v391_v49 = vmul.u32.u64.low %v70_v29, %v65_v45  ;;  %v392_v50 = vmul.u32.u64.high %v70_v29, %v65_v45, %v391_v49 }
  0x2b   :  { %vm79_vm5 = vc.u32 %v389_v48, %v391_v49  ;;  %v80_v52 = vadd.s32 1, %v392_v50  ;;  %v78_v63 = vadd.s32 %v391_v49, %v389_v48 }
  0x2d   :  { %v81_v53 = vsel %vm79_vm5, %v80_v52, %v392_v50 }
  0x2e   :  { %v82_v54 = vadd.s32 %v81_v53, %v77_v51 }
  0x30   :  { %v83_v55 = vadd.s32 536870912, %v82_v54 }
  0x32   :  { %v84_v56 = vshrl.u32 %v83_v55, 30 }
  0x34   :  { %v85_v57 = vshll.u32 %v84_v56, 30  ;;  %v108_v13 = vsub.s32 4, %v84_v56 }
  0x36   :  { %v86_v58 = vsub.s32 %v82_v54, %v85_v57  ;;  %v109_v16 = vsel %vm24_vm7, %v108_v13, %v84_v56 }
  0x37   :  { %v111_v19 = vsel %vm23_vm8, 0, %v109_v16 }
  0x38   :  { %v88_v59 = vsub.s32 0, %v86_v58  ;;  %v115_v20 = vadd.s32 3, %v111_v19  ;;  %v219_v22 = vand.u32 3, %v111_v19 }
  0x3a   :  { %v277_v60 = vmin.u32 %v88_v59, %v86_v58  ;;  %v116_v21 = vand.u32 3, %v115_v20  ;;  %vm224_vm10 = vcmp.eq.s32.totalorder %v219_v22, 2  ;;  %vm221_vm12 = vcmp.eq.s32.totalorder %v219_v22, 0 }
  0x3b   :  { %vm220_vm14 = vcmp.lt.s32.totalorder %v219_v22, 2 }
  0x3c   :  { %v90_v61 = vclz %v277_v60  ;;  %vm121_vm9 = vcmp.eq.s32.totalorder %v116_v21, 2  ;;  %vm118_vm11 = vcmp.eq.s32.totalorder %v116_v21, 0  ;;  %vm117_vm13 = vcmp.lt.s32.totalorder %v116_v21, 2 }
  0x3e   :  { %v278_v62 = vadd.s32 4294967294, %v90_v61 }
  0x40   :  { %vm279_vm6 = vcmp.lt.s32.totalorder %v278_v62, 0 }
  0x41   :  { %v93_v1 = vsel %vm279_vm6, 0, %v278_v62 }
  0x42   :  { %v94_v2 = vsub.s32 32, %v93_v1  ;;  %v95_v4 = vshll.u32 %v86_v58, %v93_v1  ;;  %v98_v5 = vsub.s32 4294967266, %v93_v1 }
  0x44   :  { %v96_v6 = vshrl.u32 %v78_v63, %v94_v2  ;;  %v99_v7 = vadd.s32 127, %v98_v5 }
  0x46   :  { %v97_v8 = vor.u32 %v96_v6, %v95_v4  ;;  %v100_v9 = vshll.u32 %v99_v7, 23 }
  0x48   :  { %v101_v10 = vor.u32 4788187, %v100_v9  ;;  %v104_v11 = vcvt.s32.f32 %v97_v8 }
  0x4a   :  { %v102_v12 = vand.u32 2147483647, %v101_v10 }
  0x4c   :  { %v105_v14 = vmul.f32 %v104_v11, %v102_v12 }
  0x4e   :  { %v106_v15 = vxor.u32 2147483648, %v105_v14 }
  0x50   :  { %v107_v17 = vsel %vm24_vm7, %v106_v15, %v105_v14 }
  0x51   :  { %v110_v18 = vsel %vm23_vm8, %v382_v0, %v107_v17 }
  0x52   :  { %298 = vcosq.f32 %v110_v18 }
  0x53   :  { %300 = vsinq.f32 %v110_v18 }
  0x5c   :  { %v299_v23 = vpop.eup %298 }
  0x5d   :  { %v301_v24 = vpop.eup %300  ;;  %v122_v25 = vxor.u32 2147483648, %v299_v23 }
  0x5e   :  { %v119_v3 = vxor.u32 2147483648, %v301_v24 }
  0x5f   :  { %v123_v26 = vsel %vm121_vm9, %v122_v25, %v301_v24  ;;  %v226_v27 = vsel %vm224_vm10, %v122_v25, %v301_v24 }
  0x60   :  { %v120_v28 = vsel %vm118_vm11, %v299_v23, %v119_v3  ;;  %v223_v29 = vsel %vm221_vm12, %v299_v23, %v119_v3 }
  0x61   :  { %v124_v30 = vsel %vm117_vm13, %v120_v28, %v123_v26  ;;  %v227_v31 = vsel %vm220_vm14, %v223_v29, %v226_v27 }
  0x62   :  { %v125_v32 = vsel %vm114_vm15, nan, %v124_v30  ;;  %v228_v33 = vsel %vm114_vm15, nan, %v227_v31 }
  0x63   :  { %229 = vst [vmem:[#allocation5] sm:$0xf] %v125_v32  ;;  %v232_v34 = vmul.f32 2.0, %v125_v32  ;;  %v235_v35 = vmul.f32 %v125_v32, %v125_v32  ;;  %231 = vst [vmem:[#allocation5 + $0x4] sm:$0xf] %v228_v33  ;;  %v234_v36 = vmul.f32 %v228_v33, %v228_v33 }
  0x65   :  { %v233_v37 = vmul.f32 %v232_v34, %v228_v33  ;;  %v236_v38 = vsub.f32 %v234_v36, %v235_v35 }
  0x67   :  { %238 = vst [vmem:[#allocation5 + $0x8] sm:$0xf] %v233_v37  ;;  %240 = vst [vmem:[#allocation5 + $0xc] sm:$0xf] %v236_v38  ;;  %v241_v39 = vmul.f32 2.0, %v233_v37  ;;  %v243_v40 = vmul.f32 %v236_v38, %v236_v38  ;;  %v244_v0 = vmul.f32 %v233_v37, %v233_v37 }
  0x69   :  { %v242_v41 = vmul.f32 %v241_v39, %v236_v38  ;;  %v245_v42 = vsub.f32 %v243_v40, %v244_v0 }
  0x6b   :  { %247 = vst [vmem:[#allocation5 + $0x10] sm:$0xf] %v242_v41  ;;  %249 = vst [vmem:[#allocation5 + $0x14] sm:$0xf] %v245_v42  ;;  %v250_v43 = vmul.f32 2.0, %v242_v41  ;;  %v252_v44 = vmul.f32 %v245_v42, %v245_v42  ;;  %v253_v45 = vmul.f32 %v242_v41, %v242_v41 }
  0x6d   :  { %v251_v46 = vmul.f32 %v250_v43, %v245_v42  ;;  %v254_v47 = vsub.f32 %v252_v44, %v253_v45 }
  0x6f   :  { %256 = vst [vmem:[#allocation5 + $0x18] sm:$0xf] %v251_v46  ;;  %258 = vst [vmem:[#allocation5 + $0x1c] sm:$0xf] %v254_v47 }
  0x70   :  { %335 = shalt.err (!%p332_p12)
}
  0x71   :  { %s336_s22 = scalar_lea.hbm %s416_s1, 512 }
  0x72   :  { %p337_p13 = scmp.ne.s32.totalorder %s416_s1, %s336_s22  ;;  %p340_p0 = scmp.lt.u32.totalorder %s336_s22, %s416_s1 }
  0x74   :  { %p342_p1 = pnand %p340_p0, %p337_p13 }
  0x76   :  { %345 = shalt.err (!%p342_p1)
}
  0x77   :  { %s358_s27 = smov 64   ;;  %s359_s28 = smov 4  }
  0x78   :  { %270 = dma.vmem_to_hbm [thread:$0]  %s265_s18, 512, %s416_s1, [#allocation4], %s358_s27, %s358_s27, %s359_s28  }
  0x79   :  { %348 = dma.done.wait [#allocation4], 512  }
  0x7a   :  { %349 = vsyncadd [#allocation4], 4294966784 }
  0x7b   :  { %274 = vsyncpa [#allocation3], 1 }
  0x7c   :  { %275 = vsyncpa [#allocation4], 1 }

</bundles_post_ra>
